<compile_context>
chip_gen: v6e
topology: v6e:2x2x1
jax: 0.10.0
libtpu: 0.0.40
codegen_flags: <defaults>
</compile_context>

<pallas_src>
import functools

import jax
import jax.numpy as jnp
from jax.experimental import pallas as pl
from jax.experimental.pallas import tpu as pltpu


def _round_up(x: int, m: int) -> int:
    return ((x + m - 1) // m) * m


def _pick_tile(dim: int, preferred: int, align: int) -> int:
    # Use the preferred production tile if the dim is large enough, otherwise a
    # single aligned block covering the whole (padded) dim.
    return preferred if dim >= preferred else _round_up(dim, align)


def _eq_linear_kernel(x_ref, w_ref, b_ref, o_ref, acc_ref, *,
                      weight_scale, bias_scale, neg_slope, use_bf16):
    k = pl.program_id(2)

    @pl.when(k == 0)
    def _():
        acc_ref[...] = jnp.zeros_like(acc_ref)

    x = x_ref[...]            # (tm, tk)
    w = w_ref[...]            # (tn, tk)  -- native (out_dim, in_dim) layout
    if use_bf16:
        x = x.astype(jnp.bfloat16)
        w = w.astype(jnp.bfloat16)

    # Contract on the shared in_dim (last axis of both) -> (tm, tn), no transpose.
    acc_ref[...] += jax.lax.dot_general(
        x, w,
        dimension_numbers=(((1,), (1,)), ((), ())),
        preferred_element_type=jnp.float32,
    )

    @pl.when(k == pl.num_programs(2) - 1)
    def _():
        # Epilogue only: one scale over (tm, tn), one bias broadcast, LeakyReLU.
        y = acc_ref[...] * weight_scale + b_ref[...] * bias_scale
        o_ref[...] = jnp.where(y >= 0.0, y, neg_slope * y).astype(o_ref.dtype)


def equalized_linear(x, weight, bias=None, *, lr_multiplier=1.0, neg_slope=0.01,
                     use_bf16_operands=False):
    """x: (B, in_dim) f32, weight: (out_dim, in_dim) f32, bias: (out_dim,) f32 or None."""
    batch, in_dim = x.shape
    out_dim = weight.shape[0]

    # Scales depend on the ORIGINAL in_dim (before any padding).
    weight_scale = float(lr_multiplier) / float(in_dim ** 0.5)
    bias_scale = float(lr_multiplier)

    if bias is None:
        bias = jnp.zeros((out_dim,), dtype=jnp.float32)
        bias_scale = 0.0

    # Tile sizes: lane-dense output (tn % 128 == 0), tm % 8 == 0, tk % 128 == 0.
    # Sized so (2 inputs + 1 output) double-buffered + accumulator fits v7x's 64 MiB
    # VMEM with plenty of headroom.
    tm = _pick_tile(batch, 256, 8)
    tn = _pick_tile(out_dim, 512, 128)
    tk = _pick_tile(in_dim, 512, 128)

    m_p = _round_up(batch, tm)
    n_p = _round_up(out_dim, tn)
    k_p = _round_up(in_dim, tk)

    # Zero-pad to tile multiples (padded rows/cols contribute 0 to the matmul;
    # padded outputs are sliced off below).
    x_p = jnp.pad(x, ((0, m_p - batch), (0, k_p - in_dim)))
    w_p = jnp.pad(weight, ((0, n_p - out_dim), (0, k_p - in_dim)))
    b_p = jnp.pad(bias.reshape(1, out_dim), ((0, 0), (0, n_p - out_dim)))

    kernel = functools.partial(
        _eq_linear_kernel,
        weight_scale=weight_scale,   # static Python floats -> compile-time constants
        bias_scale=bias_scale,
        neg_slope=float(neg_slope),
        use_bf16=bool(use_bf16_operands),
    )

    grid = (m_p // tm, n_p // tn, k_p // tk)

    out_p = pl.pallas_call(
        kernel,
        out_shape=jax.ShapeDtypeStruct((m_p, n_p), jnp.float32),
        grid_spec=pltpu.PrefetchScalarGridSpec(
            num_scalar_prefetch=0,
            grid=grid,
            in_specs=[
                pl.BlockSpec((tm, tk), lambda i, j, k: (i, k)),   # x tile
                pl.BlockSpec((tn, tk), lambda i, j, k: (j, k)),   # weight tile (native layout)
                pl.BlockSpec((1, tn), lambda i, j, k: (0, j)),    # bias tile
            ],
            out_specs=pl.BlockSpec((tm, tn), lambda i, j, k: (i, j)),
            scratch_shapes=[pltpu.VMEM((tm, tn), jnp.float32)],
        ),
        compiler_params=pltpu.CompilerParams(
            dimension_semantics=("parallel", "parallel", "arbitrary"),
        ),
    )(x_p, w_p, b_p)

    return out_p[:batch, :out_dim]


def reference(x, weight, bias, *, lr_multiplier=1.0, neg_slope=0.01):
    w = weight * (lr_multiplier / (weight.shape[1] ** 0.5))
    b = bias * lr_multiplier
    y = x @ w.T + b
    return jnp.where(y >= 0.0, y, neg_slope * y)


if __name__ == "__main__":
    key = jax.random.PRNGKey(0)
    k_x, k_w = jax.random.split(key)

    batch, in_dim, out_dim = 8, 32, 16
    lr_multiplier = 1.0
    bias_init = 0.0

    x = jax.random.normal(k_x, (batch, in_dim), dtype=jnp.float32)
    # Parameter init matching nn.Parameter(torch.randn([out, in]) / lr_multiplier)
    weight = jax.random.normal(k_w, (out_dim, in_dim), dtype=jnp.float32) / lr_multiplier
    bias = jnp.full((out_dim,), bias_init, dtype=jnp.float32)

    out = equalized_linear(x, weight, bias, lr_multiplier=lr_multiplier)
    out = jax.block_until_ready(out)

    ref = reference(x, weight, bias, lr_multiplier=lr_multiplier)
    assert out.shape == (batch, out_dim)
    assert jnp.allclose(out, ref, atol=1e-5, rtol=1e-5), "mismatch vs reference"

    print("KERNEL_OK")
</pallas_src>

<mosaic_0001>
module attributes {stable_mosaic.version = 11 : i64} {
  func.func @_eq_linear_kernel(%arg0: i32, %arg1: i32, %arg2: i32, %arg3: memref<8x128xf32, #tpu.memory_space<vmem>>, %arg4: memref<128x128xf32, #tpu.memory_space<vmem>>, %arg5: memref<1x128xf32, #tpu.memory_space<vmem>>, %arg6: memref<8x128xf32, #tpu.memory_space<vmem>>, %arg7: memref<8x128xf32, #tpu.memory_space<vmem>>) attributes {dimension_semantics = [#tpu.dimension_semantics<parallel>, #tpu.dimension_semantics<parallel>, #tpu.dimension_semantics<arbitrary>], iteration_bounds = array<i64: 1, 1, 1>, scalar_prefetch = 0 : i64, scratch_operands = 1 : i64, tpu.core_type = #tpu.core_type<tc>, window_params = [{transform_indices = @transform_0, window_bounds = array<i64: 8, 128>}, {transform_indices = @transform_1, window_bounds = array<i64: 128, 128>}, {transform_indices = @transform_2, window_bounds = array<i64: 1, 128>}, {transform_indices = @transform_3, window_bounds = array<i64: 8, 128>}]} {
    %c0_i32 = arith.constant 0 : i32
    %0 = arith.cmpi eq, %arg2, %c0_i32 : i32
    %1 = arith.extui %0 : i1 to i32
    %c0_i32_0 = arith.constant 0 : i32
    %2 = arith.cmpi ne, %1, %c0_i32_0 : i32
    scf.if %2 {
      %cst_10 = arith.constant 0.000000e+00 : f32
      %12 = vector.broadcast %cst_10 : f32 to vector<8x128xf32>
      %c0_11 = arith.constant 0 : index
      %c0_12 = arith.constant 0 : index
      %13 = vector.load %arg7[%c0_11, %c0_12] : memref<8x128xf32, #tpu.memory_space<vmem>>, vector<8x128xf32>
      tpu.vector_store %arg7[%c0_11, %c0_12], %12 {strides = array<i32>} : memref<8x128xf32, #tpu.memory_space<vmem>>, vector<8x128xf32>,
    } else {
    }
    %c0 = arith.constant 0 : index
    %c0_1 = arith.constant 0 : index
    %3 = vector.load %arg3[%c0, %c0_1] : memref<8x128xf32, #tpu.memory_space<vmem>>, vector<8x128xf32>
    %c0_2 = arith.constant 0 : index
    %c0_3 = arith.constant 0 : index
    %4 = vector.load %arg4[%c0_2, %c0_3] : memref<128x128xf32, #tpu.memory_space<vmem>>, vector<128x128xf32>
    %c0_4 = arith.constant 0 : index
    %c0_5 = arith.constant 0 : index
    %5 = vector.load %arg7[%c0_4, %c0_5] : memref<8x128xf32, #tpu.memory_space<vmem>>, vector<8x128xf32>
    %cst = arith.constant dense<0.000000e+00> : vector<8x128xf32>
    %6 = tpu.matmul %3, %4, %cst {dimension_numbers = #tpu.dot_dimension_numbers<[1], [1], [0], [0], [0, 0, 1, 0], [], []>} : vector<8x128xf32>, vector<128x128xf32>, vector<8x128xf32> -> vector<8x128xf32>
    %7 = arith.addf %5, %6 : vector<8x128xf32>
    %c0_6 = arith.constant 0 : index
    %c0_7 = arith.constant 0 : index
    %8 = vector.load %arg7[%c0_6, %c0_7] : memref<8x128xf32, #tpu.memory_space<vmem>>, vector<8x128xf32>
    tpu.vector_store %arg7[%c0_6, %c0_7], %7 {strides = array<i32>} : memref<8x128xf32, #tpu.memory_space<vmem>>, vector<8x128xf32>,
    %c0_i32_8 = arith.constant 0 : i32
    %9 = arith.cmpi eq, %arg2, %c0_i32_8 : i32
    %10 = arith.extui %9 : i1 to i32
    %c0_i32_9 = arith.constant 0 : i32
    %11 = arith.cmpi ne, %10, %c0_i32_9 : i32
    scf.if %11 {
      %c0_10 = arith.constant 0 : index
      %c0_11 = arith.constant 0 : index
      %12 = vector.load %arg7[%c0_10, %c0_11] : memref<8x128xf32, #tpu.memory_space<vmem>>, vector<8x128xf32>
      %cst_12 = arith.constant 0.176776692 : f32
      %13 = vector.broadcast %cst_12 : f32 to vector<8x128xf32>
      %14 = arith.mulf %12, %13 : vector<8x128xf32>
      %c0_13 = arith.constant 0 : index
      %c0_14 = arith.constant 0 : index
      %15 = vector.load %arg5[%c0_13, %c0_14] : memref<1x128xf32, #tpu.memory_space<vmem>>, vector<1x128xf32>
      %cst_15 = arith.constant 1.000000e+00 : f32
      %16 = vector.broadcast %cst_15 : f32 to vector<1x128xf32>
      %17 = arith.mulf %15, %16 : vector<1x128xf32>
      %18 = vector.broadcast %17 : vector<1x128xf32> to vector<8x128xf32>
      %19 = arith.addf %14, %18 : vector<8x128xf32>
      %cst_16 = arith.constant 0.000000e+00 : f32
      %20 = vector.broadcast %cst_16 : f32 to vector<8x128xf32>
      %21 = arith.cmpf oge, %19, %20 : vector<8x128xf32>
      %cst_17 = arith.constant 0.00999999977 : f32
      %22 = vector.broadcast %cst_17 : f32 to vector<8x128xf32>
      %23 = arith.mulf %22, %19 : vector<8x128xf32>
      %24 = arith.select %21, %19, %23 : vector<8x128xi1>, vector<8x128xf32>
      %c0_18 = arith.constant 0 : index
      %c0_19 = arith.constant 0 : index
      %25 = vector.load %arg6[%c0_18, %c0_19] : memref<8x128xf32, #tpu.memory_space<vmem>>, vector<8x128xf32>
      tpu.vector_store %arg6[%c0_18, %c0_19], %24 {strides = array<i32>} : memref<8x128xf32, #tpu.memory_space<vmem>>, vector<8x128xf32>,
    } else {
    }
    return
  }
  func.func @transform_0(%arg0: i32, %arg1: i32, %arg2: i32) -> (i32, i32) {
    %c0_i32 = arith.constant 0 : i32
    return %arg0, %arg2 : i32, i32
  }
  func.func @transform_1(%arg0: i32, %arg1: i32, %arg2: i32) -> (i32, i32) {
    %c0_i32 = arith.constant 0 : i32
    return %arg1, %arg2 : i32, i32
  }
  func.func @transform_2(%arg0: i32, %arg1: i32, %arg2: i32) -> (i32, i32) {
    %c0_i32 = arith.constant 0 : i32
    %c0_i32_0 = arith.constant 0 : i32
    return %c0_i32, %arg1 : i32, i32
  }
  func.func @transform_3(%arg0: i32, %arg1: i32, %arg2: i32) -> (i32, i32) {
    %c0_i32 = arith.constant 0 : i32
    return %arg0, %arg1 : i32, i32
  }
}

</mosaic_0001>

<bundles_post_ra>
// kernel: tpu_custom_call.1
= control target key start
LH: loop header
LB: loop body
LE: loop exit
PB: predicated region body
PF: predicated region fallthrough
CT: control target
= control target key end

     0   :  { %8 = vsyncpa [#allocation4], 0  ;;  %s334_s0 = inlined_call_operand.hbm [shape: f32[8,128], index: 0, kind: input, shape index: {}]   ;;  %s335_s1 = inlined_call_operand.hbm [shape: f32[128,128], index: 1, kind: input, shape index: {}]   ;;  %s336_s2 = inlined_call_operand.vmem [shape: f32[1,128], index: 2, kind: input, shape index: {}]   ;;  %s337_s3 = inlined_call_operand.hbm [shape: f32[8,128], index: 3, kind: output, shape index: {}]  }
   0x1   :  { %9 = vsyncpa [#allocation7], 0 }
   0x2   :  { %10 = vsyncpa [#allocation5], 0  ;;  %s295_s12 = smov [#allocation3]   ;;  %s296_s14 = smov [#allocation6]  }
   0x3   :  { %s17_s13 = sshll.u32 %s295_s12, 4  ;;  %s26_s15 = sshll.u32 %s296_s14, 4  ;;  %s18_s13 = int_to_ptr.vmem [resolvable:$true] %s17_s13  ;;  %s27_s15 = int_to_ptr.vmem [resolvable:$true] %s26_s15 }
   0x4   :  { %s237_s16 = scalar_lea.vmem %s18_s13, 128  ;;  %p242_p1 = scmp.lt.s32.totalorder %s18_s13, %s18_s13 }
   0x5   :  { %p238_p0 = scmp.ne.s32.totalorder %s18_s13, %s237_s16  ;;  %p243_p2 = scmp.lt.s32.totalorder %s237_s16, %s237_s16 }
   0x7   :  { %p244_p3 = por %p243_p2, %p242_p1 }
   0x9   :  { %p245_p4 = pnand %p244_p3, %p238_p0 }
   0xb   :  { %248 = shalt.err (!%p245_p4)
}
   0xc   :  { %20 = dma.hbm_to_vmem [thread:$0]  %s334_s0, 128, %s18_s13, [#allocation4]  }
   0xd   :  { %s257_s19 = scalar_lea.vmem %s27_s15, 2048  ;;  %p262_p6 = scmp.lt.s32.totalorder %s27_s15, %s27_s15 }
   0xe   :  { %p258_p5 = scmp.ne.s32.totalorder %s27_s15, %s257_s19  ;;  %p263_p7 = scmp.lt.s32.totalorder %s257_s19, %s257_s19 }
  0x10   :  { %p264_p8 = por %p263_p7, %p262_p6 }
  0x12   :  { %p265_p9 = pnand %p264_p8, %p258_p5 }
  0x14   :  { %268 = shalt.err (!%p265_p9)
}
  0x15   :  { %s297_s20 = smov 128   ;;  %s298_s21 = smov 8  }
  0x16   :  { %32 = dma.hbm_to_vmem [thread:$0]  %s335_s1, 2048, %s27_s15, [#allocation7], %s297_s20, %s297_s20, %s298_s21  }
  0x17   :  { %289 = dma.done.wait [#allocation4], 128  }
  0x18   :  { %290 = vsyncadd [#allocation4], 4294967168 }
  0x19   :  { %291 = dma.done.wait [#allocation7], 2048  }
  0x1a   :  { %292 = vsyncadd [#allocation7], 4294965248  ;;  %v299_v0 = vmov 0.0   ;;  %vm300_vm0 = vmmov 0   ;;  %v62_v1 = vld [vmem:[#allocation6 + $0x78] sm:$0xff]  ;;  %v61_v2 = vld [vmem:[#allocation6 + $0x70] sm:$0xff] }
  0x1b   :  { %187 = vmatprep.subr.mxu0 %v299_v0  ;;  %219 = vmatprep.mubr.msk.f32.mxu0 %vm300_vm0, %v299_v0  ;;  %v60_v3 = vld [vmem:[#allocation6 + $0x68] sm:$0xff]  ;;  %v59_v4 = vld [vmem:[#allocation6 + $0x60] sm:$0xff]  ;;  %v58_v5 = vld [vmem:[#allocation6 + $0x58] sm:$0xff]  ;;  %s301_s24 = smov [#allocation8]  }
  0x1c   :  { %188 = vmatpush3.xpose.msra.mxu0 %v62_v1  ;;  %v57_v6 = vld [vmem:[#allocation6 + $0x50] sm:$0xff]  ;;  %v56_v7 = vld [vmem:[#allocation6 + $0x48] sm:$0xff]  ;;  %v55_v8 = vld [vmem:[#allocation6 + $0x40] sm:$0xff]  ;;  %s159_s25 = sshll.u32 %s301_s24, 4  ;;  %s160_s25 = int_to_ptr.vmem [resolvable:$true] %s159_s25 }
  0x1d   :  { %189 = vmatprep.subr.mxu0 %v299_v0  ;;  %v54_v9 = vld [vmem:[#allocation6 + $0x38] sm:$0xff]  ;;  %v53_v10 = vld [vmem:[#allocation6 + $0x30] sm:$0xff]  ;;  %v52_v11 = vld [vmem:[#allocation6 + $0x28] sm:$0xff]  ;;  %s269_s26 = scalar_lea.vmem %s160_s25, 128  ;;  %p274_p11 = scmp.lt.s32.totalorder %s160_s25, %s160_s25 }
  0x1e   :  { %v51_v12 = vld [vmem:[#allocation6 + $0x20] sm:$0xff]  ;;  %v50_v13 = vld [vmem:[#allocation6 + $0x18] sm:$0xff]  ;;  %v49_v14 = vld [vmem:[#allocation6 + $0x10] sm:$0xff]  ;;  %p270_p10 = scmp.ne.s32.totalorder %s160_s25, %s269_s26  ;;  %p275_p12 = scmp.lt.s32.totalorder %s269_s26, %s269_s26 }
  0x1f   :  { %v48_v15 = vld [vmem:[#allocation6 + $0x8] sm:$0xff]  ;;  %v47_v16 = vld [vmem:[#allocation6] sm:$0xff]  ;;  %v46_v17 = vld [vmem:[#allocation3] sm:$0xff] }
  0x20   :  { %190 = vmatpush3.xpose.msra.mxu0 %v61_v2  ;;  %v169_v19 = vld [vmem:[%s336_s2] ss:$0 sm:$0xff]  ;;  %p276_p13 = por %p275_p12, %p274_p11 }
  0x21   :  { %191 = vmatprep.subr.mxu0 %v299_v0 }
  0x22   :  { %p277_p0 = pnand %p276_p13, %p270_p10 }
  0x24   :  { %192 = vmatpush3.xpose.msra.mxu0 %v60_v3 }
  0x25   :  { %193 = vmatprep.subr.mxu0 %v299_v0 }
  0x28   :  { %194 = vmatpush3.xpose.msra.mxu0 %v59_v4 }
  0x29   :  { %195 = vmatprep.subr.mxu0 %v299_v0 }
  0x2c   :  { %196 = vmatpush3.xpose.msra.mxu0 %v58_v5 }
  0x2d   :  { %197 = vmatprep.subr.mxu0 %v299_v0 }
  0x30   :  { %198 = vmatpush3.xpose.msra.mxu0 %v57_v6 }
  0x31   :  { %199 = vmatprep.subr.mxu0 %v299_v0 }
  0x34   :  { %200 = vmatpush3.xpose.msra.mxu0 %v56_v7 }
  0x35   :  { %201 = vmatprep.subr.mxu0 %v299_v0 }
  0x38   :  { %202 = vmatpush3.xpose.msra.mxu0 %v55_v8 }
  0x39   :  { %203 = vmatprep.subr.mxu0 %v299_v0 }
  0x3c   :  { %204 = vmatpush3.xpose.msra.mxu0 %v54_v9 }
  0x3d   :  { %205 = vmatprep.subr.mxu0 %v299_v0 }
  0x40   :  { %206 = vmatpush3.xpose.msra.mxu0 %v53_v10 }
  0x41   :  { %207 = vmatprep.subr.mxu0 %v299_v0 }
  0x44   :  { %208 = vmatpush3.xpose.msra.mxu0 %v52_v11 }
  0x45   :  { %209 = vmatprep.subr.mxu0 %v299_v0 }
  0x48   :  { %210 = vmatpush3.xpose.msra.mxu0 %v51_v12 }
  0x49   :  { %211 = vmatprep.subr.mxu0 %v299_v0 }
  0x4c   :  { %212 = vmatpush3.xpose.msra.mxu0 %v50_v13 }
  0x4d   :  { %213 = vmatprep.subr.mxu0 %v299_v0 }
  0x50   :  { %214 = vmatpush3.xpose.msra.mxu0 %v49_v14 }
  0x51   :  { %215 = vmatprep.subr.mxu0 %v299_v0 }
  0x54   :  { %216 = vmatpush3.xpose.msra.mxu0 %v48_v15 }
  0x55   :  { %217 = vmatprep.subr.mxu0 %v299_v0 }
  0x58   :  { %218 = vmatpush3.xpose.msra.mxu0 %v47_v16 }
  0x5b   :  { %220 = vmatmul.mubr.f32.vlgmr.msra.gmra.mxu0 %v46_v17 }
 0x11b   :  { %v130_v18 = vpop.f32.mrf.mxu0 }
 0x11c   :  { %v140_v20 = vmul.f32 0.17677669, %v130_v18 }
 0x11d   :  { %v221_v21 = vpop.f32.mrf.mxu0 }
 0x11e   :  { %v148_v22 = vadd.f32 %v169_v19, %v140_v20 }
 0x120   :  { %v150_v23 = vmul.f32 0.01, %v148_v22  ;;  %vm149_vm1 = vcmp.ge.f32.partialorder %v148_v22, 0.0 }
 0x122   :  { %v151_v24 = vsel %vm149_vm1, %v148_v22, %v150_v23 }
 0x123   :  { %152 = vst [vmem:[#allocation8] sm:$0xff] %v151_v24 }
 0x124   :  { %280 = shalt.err (!%p277_p0)
}
 0x125   :  { %162 = dma.vmem_to_hbm [thread:$0]  %s160_s25, 128, %s337_s3, [#allocation5]  }
 0x126   :  { %293 = dma.done.wait [#allocation5], 128  }
 0x127   :  { %294 = vsyncadd [#allocation5], 4294967168 }
 0x128   :  { %166 = vsyncpa [#allocation4], 1 }
 0x129   :  { %167 = vsyncpa [#allocation7], 1 }
 0x12a   :  { %168 = vsyncpa [#allocation5], 1 }

</bundles_post_ra>
